<compile_context>
chip_gen: v6e
topology: v6e:2x2x1
jax: 0.10.0
libtpu: 0.0.40
codegen_flags: <defaults>
</compile_context>

<pallas_src>
import functools

import jax
import jax.numpy as jnp
from jax.experimental import pallas as pl
from jax.experimental.pallas import tpu as pltpu


# --------------------------------------------------------------------------
# Pallas kernel: fused 1x1 conv (transposed matmul) + bias, no activation
# --------------------------------------------------------------------------
def _conv1x1_t_kernel(x_ref, w_ref, b_ref, o_ref):
    # x: (Cin, t_hw) bf16   w: (Cout, Cin) bf16   b: (Cout, 1) f32
    # o: (Cout, t_hw) f32   -- lane-dense along t_hw
    y = jnp.dot(w_ref[...], x_ref[...], preferred_element_type=jnp.float32)
    o_ref[...] = y + b_ref[...]


def conv1x1_nchw(x3d, w, b, *, t_hw_cap=2048):
    """y[n, co, p] = sum_ci w[co, ci] * x3d[n, ci, p] + b[co, 0].

    x3d: (N, Cin, HW) bf16,  w: (Cout, Cin) bf16,  b: (Cout, 1) f32.
    Returns (N, Cout, HW) f32 (still channel-major; caller permutes the small output).
    """
    n, cin, hw = x3d.shape
    cout = w.shape[0]
    # Column tile: full extent when small, else a large multiple of 128 so the output
    # store stays lane-dense; a ragged last tile is masked by Pallas (pl.cdiv grid).
    t_hw = hw if hw <= t_hw_cap else t_hw_cap
    grid = (n, pl.cdiv(hw, t_hw))
    return pl.pallas_call(
        _conv1x1_t_kernel,
        out_shape=jax.ShapeDtypeStruct((n, cout, hw), jnp.float32),
        grid=grid,
        in_specs=[
            pl.BlockSpec((None, cin, t_hw), lambda i, j: (i, 0, j)),  # activations, tiled along HW
            pl.BlockSpec((cout, cin), lambda i, j: (0, 0)),           # weight, resident across grid
            pl.BlockSpec((cout, 1), lambda i, j: (0, 0)),             # bias, resident across grid
        ],
        out_specs=pl.BlockSpec((None, cout, t_hw), lambda i, j: (i, 0, j)),
        compiler_params=pltpu.CompilerParams(
            dimension_semantics=("parallel", "parallel"),
        ),
    )(x3d, w, b)


# --------------------------------------------------------------------------
# LandmarkHead forward (matches the PyTorch module's semantics)
# --------------------------------------------------------------------------
def landmark_head_forward(params, x_nchw, num_anchors=3):
    n, c, h, w = x_nchw.shape
    hw = h * w
    # Metadata-only reshape; the bf16 cast fuses with the producer in a full network.
    x3d = x_nchw.reshape(n, c, hw).astype(jnp.bfloat16)
    y = conv1x1_nchw(x3d, params["w"], params["b"])          # (N, A*10, HW) f32
    # Output channel c = a*10 + d, so (N, HW, A*10) row-major flattens to
    # (N, H*W*A, 10) exactly like PyTorch's permute(0, 2, 3, 1).view(N, -1, 10).
    return jnp.transpose(y, (0, 2, 1)).reshape(n, hw * num_anchors, 10)


def init_params(key, inchannels=512, num_anchors=3):
    cout = num_anchors * 10
    kw, kb = jax.random.split(key)
    # PyTorch Conv2d weight is (Cout, Cin, 1, 1); stored here squeezed to (Cout, Cin), bf16.
    w = (0.1 * jax.random.normal(kw, (cout, inchannels), dtype=jnp.float32)).astype(jnp.bfloat16)
    b = 0.1 * jax.random.normal(kb, (cout, 1), dtype=jnp.float32)
    return {"w": w, "b": b}


# --------------------------------------------------------------------------
if __name__ == "__main__":
    INCHANNELS, NUM_ANCHORS = 512, 3        # module defaults
    N, H, W = 2, 16, 16                     # small spatial extent (one FPN level)

    key = jax.random.PRNGKey(0)
    kx, kp = jax.random.split(key)
    params = init_params(kp, INCHANNELS, NUM_ANCHORS)
    x = jax.random.normal(kx, (N, INCHANNELS, H, W), dtype=jnp.float32)

    fwd = jax.jit(functools.partial(landmark_head_forward, num_anchors=NUM_ANCHORS))
    out = fwd(params, x)
    jax.block_until_ready(out)

    assert out.shape == (N, H * W * NUM_ANCHORS, 10), out.shape

    # Plain-JAX reference on the SAME bf16-rounded inputs (1x1 conv == per-position matmul).
    x_bf = x.astype(jnp.bfloat16).astype(jnp.float32)
    w_f = params["w"].astype(jnp.float32)
    x_nhwc = jnp.transpose(x_bf, (0, 2, 3, 1)).reshape(N * H * W, INCHANNELS)
    ref = jnp.dot(x_nhwc, w_f.T, precision=jax.lax.Precision.HIGHEST) + params["b"].reshape(1, -1)
    ref = ref.reshape(N, H * W * NUM_ANCHORS, 10)
    max_err = float(jnp.max(jnp.abs(out - ref)))
    assert jnp.allclose(out, ref, atol=2e-3, rtol=2e-3), max_err

    print("KERNEL_OK")
</pallas_src>

<mosaic_0001>
module attributes {stable_mosaic.version = 11 : i64} {
  func.func @_conv1x1_t_kernel(%arg0: i32, %arg1: i32, %arg2: memref<1x512x256xbf16, #tpu.memory_space<vmem>>, %arg3: memref<30x512xbf16, #tpu.memory_space<vmem>>, %arg4: memref<30x1xf32, #tpu.memory_space<vmem>>, %arg5: memref<1x30x256xf32, #tpu.memory_space<vmem>>) attributes {dimension_semantics = [#tpu.dimension_semantics<parallel>, #tpu.dimension_semantics<parallel>], iteration_bounds = array<i64: 2, 1>, scalar_prefetch = 0 : i64, scratch_operands = 0 : i64, tpu.core_type = #tpu.core_type<tc>, window_params = [{transform_indices = @transform_0, window_bounds = array<i64: 1, 512, 256>}, {pipeline_mode = #tpu.pipeline_mode<synchronous>, transform_indices = @transform_1, window_bounds = array<i64: 30, 512>}, {pipeline_mode = #tpu.pipeline_mode<synchronous>, transform_indices = @transform_2, window_bounds = array<i64: 30, 1>}, {transform_indices = @transform_3, window_bounds = array<i64: 1, 30, 256>}]} {
    %c0 = arith.constant 0 : index
    %c0_0 = arith.constant 0 : index
    %0 = vector.load %arg3[%c0, %c0_0] : memref<30x512xbf16, #tpu.memory_space<vmem>>, vector<30x512xbf16>
    %c0_1 = arith.constant 0 : index
    %c0_2 = arith.constant 0 : index
    %c0_3 = arith.constant 0 : index
    %1 = vector.load %arg2[%c0_1, %c0_2, %c0_3] : memref<1x512x256xbf16, #tpu.memory_space<vmem>>, vector<1x512x256xbf16>
    %2 = vector.shape_cast %1 : vector<1x512x256xbf16> to vector<512x256xbf16>
    %cst = arith.constant dense<0.000000e+00> : vector<30x256xf32>
    %3 = tpu.matmul %0, %2, %cst {dimension_numbers = #tpu.dot_dimension_numbers<[1], [0], [0], [1], [0, 0, 1, 1], [], []>} : vector<30x512xbf16>, vector<512x256xbf16>, vector<30x256xf32> -> vector<30x256xf32>
    %c0_4 = arith.constant 0 : index
    %c0_5 = arith.constant 0 : index
    %4 = vector.load %arg4[%c0_4, %c0_5] : memref<30x1xf32, #tpu.memory_space<vmem>>, vector<30x1xf32>
    %5 = vector.broadcast %4 : vector<30x1xf32> to vector<30x256xf32>
    %6 = arith.addf %3, %5 : vector<30x256xf32>
    %c0_6 = arith.constant 0 : index
    %c0_7 = arith.constant 0 : index
    %c0_8 = arith.constant 0 : index
    %7 = vector.load %arg5[%c0_6, %c0_7, %c0_8] : memref<1x30x256xf32, #tpu.memory_space<vmem>>, vector<1x30x256xf32>
    %8 = vector.shape_cast %7 : vector<1x30x256xf32> to vector<30x256xf32>
    %9 = vector.shape_cast %6 : vector<30x256xf32> to vector<1x30x256xf32>
    tpu.vector_store %arg5[%c0_6, %c0_7, %c0_8], %9 {strides = array<i32>} : memref<1x30x256xf32, #tpu.memory_space<vmem>>, vector<1x30x256xf32>,
    return
  }
  func.func @transform_0(%arg0: i32, %arg1: i32) -> (i32, i32, i32) {
    %c0_i32 = arith.constant 0 : i32
    %c0_i32_0 = arith.constant 0 : i32
    return %arg0, %c0_i32, %arg1 : i32, i32, i32
  }
  func.func @transform_1(%arg0: i32, %arg1: i32) -> (i32, i32) {
    %c0_i32 = arith.constant 0 : i32
    %c0_i32_0 = arith.constant 0 : i32
    %c0_i32_1 = arith.constant 0 : i32
    return %c0_i32, %c0_i32_0 : i32, i32
  }
  func.func @transform_2(%arg0: i32, %arg1: i32) -> (i32, i32) {
    %c0_i32 = arith.constant 0 : i32
    %c0_i32_0 = arith.constant 0 : i32
    %c0_i32_1 = arith.constant 0 : i32
    return %c0_i32, %c0_i32_0 : i32, i32
  }
  func.func @transform_3(%arg0: i32, %arg1: i32) -> (i32, i32, i32) {
    %c0_i32 = arith.constant 0 : i32
    %c0_i32_0 = arith.constant 0 : i32
    return %arg0, %c0_i32, %arg1 : i32, i32, i32
  }
}

</mosaic_0001>

<bundles_post_ra>
// kernel: landmark_head_forward.1
= control target key start
LH: loop header
LB: loop body
LE: loop exit
PB: predicated region body
PF: predicated region fallthrough
CT: control target
= control target key end

     0   :  { %s1132_s12 = smov 0   ;;  %s1134_s13 = smov 0   ;;  %s1281_s0 = inlined_call_operand.vmem [shape: bf16[2,512,256], index: 0, kind: input, shape index: {}]   ;;  %s1282_s1 = inlined_call_operand.vmem [shape: bf16[30,512], index: 1, kind: input, shape index: {}]   ;;  %s1283_s2 = inlined_call_operand.vmem [shape: f32[30,1], index: 2, kind: input, shape index: {}]   ;;  %s1284_s3 = inlined_call_operand.vmem [shape: f32[2,30,256], index: 3, kind: output, shape index: {}]  }
   0x1   :  { %s1136_s14 = smov 0  }
   0x2 LB: > { %s25_s15 = sadd.s32 1, %s1105_s13  ;;  %p871_p0 = scmp.ge.s32.totalorder %s1109_s14, 1  ;;  %s1109_s14 = sphi %s1136_s14, %s13_s14   ;;  %s1105_s13 = sphi %s1134_s13, %s1286_s13   ;;  %s1101_s12 = sphi %s1132_s12, %s1285_s12  }
   0x3   : > { %p27_p1 = scmp.ge.s32.totalorder %s25_s15, 2  ;;  %p158_p2 = scmp.lt.s32.totalorder %s1109_s14, 3 }
   0x5   : > { %s1288_s15 = smov (%p27_p1, %s25_s15), 0  ;;  %p159_p3 = pnand %p871_p0, %p158_p2 }
   0x6   : > { %p191_p4 = scmp.lt.s32.totalorder (!%p159_p3), %s1101_s12, 1 }
   0x7   : > { %162 = sbr.rel (%p159_p3) target bundleno = 292 (0x124), region = 32 }
   0xc   : > { %v1077_v0 = vld [vmem:[%s1282_s1 + $0x4] ss:$16 sps:$4 sm:$0xff]   ;;  %v1111_v1 = vmov 0   ;;  %s1290_s12 = smov (!%p191_p4, %s1101_s12), 1  ;;  %v1080_v2 = vld [vmem:[%s1282_s1 + $0xc] ss:$16 sps:$4 sm:$0xff]  }
   0xd   : > { %977 = vset.pattern.permute.xlu0 %v1111_v1  ;;  %978 = vset.pattern.permute.xlu1 %v1111_v1  ;;  %s950_s20 = sshll.u32 %s1290_s12, 9  ;;  %v282_v49 = vld [vmem:[%s1283_s2] sm:$0xff]  ;;  %v284_v50 = vld [vmem:[%s1283_s2 + $0x10] sm:$0xff]  ;;  %v283_v53 = vld [vmem:[%s1283_s2 + $0x8] sm:$0xff]  ;;  %s951_s21 = sshll.u32 %s1290_s12, 6 }
   0xe   : > { %698 = vmatprep.mubr.bf16.mxu0 %v1077_v0  ;;  %751 = vmatprep.mubr.bf16.mxu1 %v1080_v2  ;;  %s1162_s23 = scalar_lea.vmem %s1281_s0, %s950_s20  ;;  %v285_v56 = vld [vmem:[%s1283_s2 + $0x18] sm:$0x3f]  ;;  %s1262_s24 = scalar_lea.vmem %s1284_s3, %s951_s21 }
   0xf   : > { %v979_v3 = vld [vmem:[%s1162_s23 + $0x74] ss:$8 sps:$4 sm:$0xff]   ;;  %v983_v5 = vld [vmem:[%s1162_s23 + $0x70] ss:$8 sps:$4 sm:$0xff]   ;;  %v985_v7 = vld [vmem:[%s1162_s23 + $0x64] ss:$8 sps:$4 sm:$0xff]   ;;  %288 = vperm.xlu0 %977, %v282_v49   ;;  %298 = vperm.xlu1 %978, %v284_v50  }
  0x10   : > { %v981_v4 = vld [vmem:[%s1162_s23 + $0x174] ss:$8 sps:$4 sm:$0xff]   ;;  %666 = vmatprep.subr.bf16.mxu0 %v979_v3  ;;  %v984_v6 = vld [vmem:[%s1162_s23 + $0x170] ss:$8 sps:$4 sm:$0xff]   ;;  %v987_v8 = vld [vmem:[%s1162_s23 + $0x164] ss:$8 sps:$4 sm:$0xff]  }
  0x11   : > { %719 = vmatprep.subr.bf16.mxu1 %v981_v4  ;;  %667 = vmatpush1.bf16.msra.mxu0 %v983_v5  ;;  %v989_v9 = vld [vmem:[%s1162_s23 + $0x60] ss:$8 sps:$4 sm:$0xff]   ;;  %v991_v11 = vld [vmem:[%s1162_s23 + $0x54] ss:$8 sps:$4 sm:$0xff]   ;;  %v995_v13 = vld [vmem:[%s1162_s23 + $0x50] ss:$8 sps:$4 sm:$0xff]  }
  0x12   : > { %720 = vmatpush1.bf16.msra.mxu1 %v984_v6  ;;  %668 = vmatprep.subr.bf16.mxu0 %v985_v7  ;;  %v990_v10 = vld [vmem:[%s1162_s23 + $0x160] ss:$8 sps:$4 sm:$0xff]   ;;  %v993_v12 = vld [vmem:[%s1162_s23 + $0x154] ss:$8 sps:$4 sm:$0xff]   ;;  %v996_v14 = vld [vmem:[%s1162_s23 + $0x150] ss:$8 sps:$4 sm:$0xff]  }
  0x13   : > { %721 = vmatprep.subr.bf16.mxu1 %v987_v8  ;;  %v997_v15 = vld [vmem:[%s1162_s23 + $0x44] ss:$8 sps:$4 sm:$0xff]   ;;  %v1001_v17 = vld [vmem:[%s1162_s23 + $0x40] ss:$8 sps:$4 sm:$0xff]   ;;  %v1003_v19 = vld [vmem:[%s1162_s23 + $0x34] ss:$8 sps:$4 sm:$0xff]   ;;  %293 = vperm.xlu0 %977, %v283_v53  }
  0x14   : > { %v999_v16 = vld [vmem:[%s1162_s23 + $0x144] ss:$8 sps:$4 sm:$0xff]   ;;  %v1002_v18 = vld [vmem:[%s1162_s23 + $0x140] ss:$8 sps:$4 sm:$0xff]   ;;  %v1005_v20 = vld [vmem:[%s1162_s23 + $0x134] ss:$8 sps:$4 sm:$0xff]   ;;  %303 = vperm.xlu1 %978, %v285_v56  }
  0x15   : > { %669 = vmatpush1.bf16.msra.mxu0 %v989_v9  ;;  %v1007_v21 = vld [vmem:[%s1162_s23 + $0x30] ss:$8 sps:$4 sm:$0xff]   ;;  %v1009_v23 = vld [vmem:[%s1162_s23 + $0x24] ss:$8 sps:$4 sm:$0xff]   ;;  %v1013_v25 = vld [vmem:[%s1162_s23 + $0x20] ss:$8 sps:$4 sm:$0xff]  }
  0x16   : > { %722 = vmatpush1.bf16.msra.mxu1 %v990_v10  ;;  %670 = vmatprep.subr.bf16.mxu0 %v991_v11  ;;  %v1008_v22 = vld [vmem:[%s1162_s23 + $0x130] ss:$8 sps:$4 sm:$0xff]   ;;  %v1011_v24 = vld [vmem:[%s1162_s23 + $0x124] ss:$8 sps:$4 sm:$0xff]   ;;  %v1014_v26 = vld [vmem:[%s1162_s23 + $0x120] ss:$8 sps:$4 sm:$0xff]  }
  0x17   : > { %723 = vmatprep.subr.bf16.mxu1 %v993_v12  ;;  %v1015_v27 = vld [vmem:[%s1162_s23 + $0x14] ss:$8 sps:$4 sm:$0xff]   ;;  %v1019_v29 = vld [vmem:[%s1162_s23 + $0x10] ss:$8 sps:$4 sm:$0xff]   ;;  %v1021_v31 = vld [vmem:[%s1162_s23 + $0x4] ss:$8 sps:$4 sm:$0xff]  }
  0x18   : > { %v1017_v28 = vld [vmem:[%s1162_s23 + $0x114] ss:$8 sps:$4 sm:$0xff]   ;;  %v1020_v30 = vld [vmem:[%s1162_s23 + $0x110] ss:$8 sps:$4 sm:$0xff]   ;;  %v1023_v32 = vld [vmem:[%s1162_s23 + $0x104] ss:$8 sps:$4 sm:$0xff]  }
  0x19   : > { %671 = vmatpush1.bf16.msra.mxu0 %v995_v13  ;;  %v1025_v33 = vld [vmem:[%s1162_s23] ss:$8 sps:$4 sm:$0xff]   ;;  %v1027_v35 = vld [vmem:[%s1162_s23 + $0xf4] ss:$8 sps:$4 sm:$0xff]   ;;  %v1031_v37 = vld [vmem:[%s1162_s23 + $0xf0] ss:$8 sps:$4 sm:$0xff]  }
  0x1a   : > { %724 = vmatpush1.bf16.msra.mxu1 %v996_v14  ;;  %672 = vmatprep.subr.bf16.mxu0 %v997_v15  ;;  %v1026_v34 = vld [vmem:[%s1162_s23 + $0x100] ss:$8 sps:$4 sm:$0xff]   ;;  %v1029_v36 = vld [vmem:[%s1162_s23 + $0x1f4] ss:$8 sps:$4 sm:$0xff]   ;;  %v1032_v38 = vld [vmem:[%s1162_s23 + $0x1f0] ss:$8 sps:$4 sm:$0xff]  }
  0x1b   : > { %725 = vmatprep.subr.bf16.mxu1 %v999_v16  ;;  %v1033_v39 = vld [vmem:[%s1162_s23 + $0xe4] ss:$8 sps:$4 sm:$0xff]   ;;  %v1037_v41 = vld [vmem:[%s1162_s23 + $0xe0] ss:$8 sps:$4 sm:$0xff]   ;;  %v1039_v43 = vld [vmem:[%s1162_s23 + $0xd4] ss:$8 sps:$4 sm:$0xff]  }
  0x1c   : > { %v1035_v40 = vld [vmem:[%s1162_s23 + $0x1e4] ss:$8 sps:$4 sm:$0xff]   ;;  %v1038_v42 = vld [vmem:[%s1162_s23 + $0x1e0] ss:$8 sps:$4 sm:$0xff]   ;;  %v1041_v44 = vld [vmem:[%s1162_s23 + $0x1d4] ss:$8 sps:$4 sm:$0xff]  }
  0x1d   : > { %673 = vmatpush1.bf16.msra.mxu0 %v1001_v17  ;;  %v1043_v45 = vld [vmem:[%s1162_s23 + $0xd0] ss:$8 sps:$4 sm:$0xff]   ;;  %v1045_v47 = vld [vmem:[%s1162_s23 + $0xc4] ss:$8 sps:$4 sm:$0xff]   ;;  %v1049_v51 = vld [vmem:[%s1162_s23 + $0xc0] ss:$8 sps:$4 sm:$0xff]  }
  0x1e   : > { %726 = vmatpush1.bf16.msra.mxu1 %v1002_v18  ;;  %674 = vmatprep.subr.bf16.mxu0 %v1003_v19  ;;  %v1044_v46 = vld [vmem:[%s1162_s23 + $0x1d0] ss:$8 sps:$4 sm:$0xff]   ;;  %v1047_v48 = vld [vmem:[%s1162_s23 + $0x1c4] ss:$8 sps:$4 sm:$0xff]   ;;  %v1050_v52 = vld [vmem:[%s1162_s23 + $0x1c0] ss:$8 sps:$4 sm:$0xff]  }
  0x1f   : > { %727 = vmatprep.subr.bf16.mxu1 %v1005_v20  ;;  %v1051_v54 = vld [vmem:[%s1162_s23 + $0xb4] ss:$8 sps:$4 sm:$0xff]   ;;  %v1055_v57 = vld [vmem:[%s1162_s23 + $0xb0] ss:$8 sps:$4 sm:$0xff]   ;;  %v1057_v59 = vld [vmem:[%s1162_s23 + $0xa4] ss:$8 sps:$4 sm:$0xff]  }
  0x20   : > { %v1053_v55 = vld [vmem:[%s1162_s23 + $0x1b4] ss:$8 sps:$4 sm:$0xff]   ;;  %v1056_v58 = vld [vmem:[%s1162_s23 + $0x1b0] ss:$8 sps:$4 sm:$0xff]   ;;  %v1059_v60 = vld [vmem:[%s1162_s23 + $0x1a4] ss:$8 sps:$4 sm:$0xff]  }
  0x21   : > { %675 = vmatpush1.bf16.msra.mxu0 %v1007_v21  ;;  %v1061_v61 = vld [vmem:[%s1162_s23 + $0xa0] ss:$8 sps:$4 sm:$0xff]   ;;  %v1063_v63 = vld [vmem:[%s1162_s23 + $0x94] ss:$8 sps:$4 sm:$0xff]   ;;  %v1067_v1 = vld [vmem:[%s1162_s23 + $0x90] ss:$8 sps:$4 sm:$0xff]  }
  0x22   : > { %728 = vmatpush1.bf16.msra.mxu1 %v1008_v22  ;;  %676 = vmatprep.subr.bf16.mxu0 %v1009_v23  ;;  %v1062_v62 = vld [vmem:[%s1162_s23 + $0x1a0] ss:$8 sps:$4 sm:$0xff]   ;;  %v1065_v0 = vld [vmem:[%s1162_s23 + $0x194] ss:$8 sps:$4 sm:$0xff]   ;;  %v1068_v2 = vld [vmem:[%s1162_s23 + $0x190] ss:$8 sps:$4 sm:$0xff]  }
  0x23   : > { %729 = vmatprep.subr.bf16.mxu1 %v1011_v24  ;;  %v1069_v3 = vld [vmem:[%s1162_s23 + $0x84] ss:$8 sps:$4 sm:$0xff]   ;;  %v1073_v5 = vld [vmem:[%s1162_s23 + $0x80] ss:$8 sps:$4 sm:$0xff]  }
  0x24   : > { %v1071_v4 = vld [vmem:[%s1162_s23 + $0x184] ss:$8 sps:$4 sm:$0xff]   ;;  %v1074_v6 = vld [vmem:[%s1162_s23 + $0x180] ss:$8 sps:$4 sm:$0xff]  }
  0x25   : > { %677 = vmatpush1.bf16.msra.mxu0 %v1013_v25  ;;  %v1075_v7 = vld [vmem:[%s1282_s1] ss:$16 sps:$4 sm:$0xff]   ;;  %v1078_v8 = vld [vmem:[%s1282_s1 + $0x8] ss:$16 sps:$4 sm:$0xff]  }
  0x26   : > { %730 = vmatpush1.bf16.msra.mxu1 %v1014_v26  ;;  %678 = vmatprep.subr.bf16.mxu0 %v1015_v27  ;;  %v1081_v9 = vld [vmem:[%s1282_s1 + $0x24] ss:$16 sps:$4 sm:$0x7f]   ;;  %v1083_v10 = vld [vmem:[%s1282_s1 + $0x2c] ss:$16 sps:$4 sm:$0x7f]  }
  0x27   : > { %731 = vmatprep.subr.bf16.mxu1 %v1017_v28  ;;  %v1085_v11 = vld [vmem:[%s1282_s1 + $0x20] ss:$16 sps:$4 sm:$0x7f]   ;;  %v1086_v12 = vld [vmem:[%s1282_s1 + $0x28] ss:$16 sps:$4 sm:$0x7f]  }
  0x29   : > { %679 = vmatpush1.bf16.msra.mxu0 %v1019_v29 }
  0x2a   : > { %732 = vmatpush1.bf16.msra.mxu1 %v1020_v30  ;;  %680 = vmatprep.subr.bf16.mxu0 %v1021_v31 }
  0x2b   : > { %733 = vmatprep.subr.bf16.mxu1 %v1023_v32 }
  0x2d   : > { %681 = vmatpush1.bf16.msra.mxu0 %v1025_v33 }
  0x2e   : > { %734 = vmatpush1.bf16.msra.mxu1 %v1026_v34  ;;  %682 = vmatprep.subr.bf16.mxu0 %v1027_v35 }
  0x2f   : > { %735 = vmatprep.subr.bf16.mxu1 %v1029_v36 }
  0x31   : > { %683 = vmatpush2.bf16.msra.mxu0 %v1031_v37 }
  0x32   : > { %736 = vmatpush2.bf16.msra.mxu1 %v1032_v38  ;;  %684 = vmatprep.subr.bf16.mxu0 %v1033_v39 }
  0x33   : > { %737 = vmatprep.subr.bf16.mxu1 %v1035_v40 }
  0x35   : > { %685 = vmatpush2.bf16.msra.mxu0 %v1037_v41 }
  0x36   : > { %738 = vmatpush2.bf16.msra.mxu1 %v1038_v42  ;;  %686 = vmatprep.subr.bf16.mxu0 %v1039_v43 }
  0x37   : > { %739 = vmatprep.subr.bf16.mxu1 %v1041_v44 }
  0x39   : > { %687 = vmatpush2.bf16.msra.mxu0 %v1043_v45 }
  0x3a   : > { %740 = vmatpush2.bf16.msra.mxu1 %v1044_v46  ;;  %688 = vmatprep.subr.bf16.mxu0 %v1045_v47 }
  0x3b   : > { %741 = vmatprep.subr.bf16.mxu1 %v1047_v48 }
  0x3d   : > { %689 = vmatpush2.bf16.msra.mxu0 %v1049_v51 }
  0x3e   : > { %742 = vmatpush2.bf16.msra.mxu1 %v1050_v52  ;;  %690 = vmatprep.subr.bf16.mxu0 %v1051_v54 }
  0x3f   : > { %743 = vmatprep.subr.bf16.mxu1 %v1053_v55 }
  0x41   : > { %691 = vmatpush2.bf16.msra.mxu0 %v1055_v57 }
  0x42   : > { %744 = vmatpush2.bf16.msra.mxu1 %v1056_v58  ;;  %692 = vmatprep.subr.bf16.mxu0 %v1057_v59 }
  0x43   : > { %745 = vmatprep.subr.bf16.mxu1 %v1059_v60 }
  0x45   : > { %693 = vmatpush2.bf16.msra.mxu0 %v1061_v61 }
  0x46   : > { %746 = vmatpush2.bf16.msra.mxu1 %v1062_v62  ;;  %694 = vmatprep.subr.bf16.mxu0 %v1063_v63 }
  0x47   : > { %747 = vmatprep.subr.bf16.mxu1 %v1065_v0 }
  0x49   : > { %695 = vmatpush2.bf16.msra.mxu0 %v1067_v1 }
  0x4a   : > { %748 = vmatpush2.bf16.msra.mxu1 %v1068_v2  ;;  %696 = vmatprep.subr.bf16.mxu0 %v1069_v3 }
  0x4b   : > { %749 = vmatprep.subr.bf16.mxu1 %v1071_v4 }
  0x4d   : > { %697 = vmatpush2.bf16.msra.mxu0 %v1073_v5 }
  0x4e   : > { %750 = vmatpush2.bf16.msra.mxu1 %v1074_v6 }
  0x50   : > { %699 = vmatmul.mubr.bf16.vlgmr.msra.gmra.mxu0 %v1075_v7 }
  0x51   : > { %752 = vmatmul.mubr.bf16.vlgmr.msra.gmra.mxu1 %v1078_v8  ;;  %708 = vmatprep.mubr.bf16.mxu0 %v1081_v9 }
  0x52   : > { %761 = vmatprep.mubr.bf16.mxu1 %v1083_v10 }
  0x58   : > { %709 = vmatmul.mubr.bf16.gmra.mxu0 %v1085_v11 }
  0x59   : > { %762 = vmatmul.mubr.bf16.gmra.mxu1 %v1086_v12 }
  0x8a   : > { %v289_v13 = vpop.permute.xlu0 %288  ;;  %v299_v26 = vpop.permute.xlu1 %298 }
  0x8e   : > { %v294_v17 = vpop.permute.xlu0 %293 }
  0x8f   : > { %v304_v38 = vpop.permute.xlu1 %303 }
 0x110   : > { %v700_v14 = vpop.f32.mrf.mxu0 }
 0x111   : > { %v753_v15 = vpop.f32.mrf.mxu1  ;;  %v701_v16 = vadd.f32 %v700_v14, %v289_v13 }
 0x112   : > { %v702_v18 = vpop.f32.mrf.mxu0 }
 0x113   : > { %v755_v19 = vpop.f32.mrf.mxu1  ;;  %v754_v20 = vadd.f32 %v753_v15, %v701_v16  ;;  %v703_v21 = vadd.f32 %v702_v18, %v289_v13 }
 0x114   : > { %v704_v22 = vpop.f32.mrf.mxu0 }
 0x115   : > { %v757_v23 = vpop.f32.mrf.mxu1  ;;  %772 = vst [vmem:[%s1262_s24] sm:$0xff] %v754_v20  ;;  %v756_v24 = vadd.f32 %v755_v19, %v703_v21  ;;  %v705_v25 = vadd.f32 %v704_v22, %v294_v17 }
 0x116   : > { %v706_v27 = vpop.f32.mrf.mxu0 }
 0x117   : > { %v759_v28 = vpop.f32.mrf.mxu1  ;;  %773 = vst [vmem:[%s1262_s24 + $0x8] sm:$0xff] %v756_v24  ;;  %v758_v29 = vadd.f32 %v757_v23, %v705_v25  ;;  %v707_v30 = vadd.f32 %v706_v27, %v294_v17 }
 0x118   : > { %v710_v31 = vpop.f32.mrf.mxu0 }
 0x119   : > { %v763_v32 = vpop.f32.mrf.mxu1  ;;  %774 = vst [vmem:[%s1262_s24 + $0x10] sm:$0xff] %v758_v29  ;;  %v760_v33 = vadd.f32 %v759_v28, %v707_v30  ;;  %v711_v34 = vadd.f32 %v710_v31, %v299_v26 }
 0x11a   : > { %v712_v35 = vpop.f32.mrf.mxu0 }
 0x11b   : > { %v765_v36 = vpop.f32.mrf.mxu1  ;;  %775 = vst [vmem:[%s1262_s24 + $0x18] sm:$0xff] %v760_v33  ;;  %v764_v37 = vadd.f32 %v763_v32, %v711_v34  ;;  %v713_v39 = vadd.f32 %v712_v35, %v299_v26 }
 0x11c   : > { %v714_v40 = vpop.f32.mrf.mxu0 }
 0x11d   : > { %v767_v41 = vpop.f32.mrf.mxu1  ;;  %776 = vst [vmem:[%s1262_s24 + $0x20] sm:$0xff] %v764_v37  ;;  %v766_v42 = vadd.f32 %v765_v36, %v713_v39  ;;  %v715_v43 = vadd.f32 %v714_v40, %v304_v38 }
 0x11e   : > { %v716_v44 = vpop.f32.mrf.mxu0 }
 0x11f   : > { %777 = vst [vmem:[%s1262_s24 + $0x28] sm:$0xff] %v766_v42  ;;  %v768_v45 = vadd.f32 %v767_v41, %v715_v43  ;;  %v717_v46 = vadd.f32 %v716_v44, %v304_v38  ;;  %v769_v47 = vpop.f32.mrf.mxu1 }
 0x121   : > { %778 = vst [vmem:[%s1262_s24 + $0x30] sm:$0x3f] %v768_v45  ;;  %v770_v48 = vadd.f32 %v769_v47, %v717_v46 }
 0x123   : > { %779 = vst [vmem:[%s1262_s24 + $0x38] sm:$0x3f] %v770_v48 }
 0x124 PF: > { %s13_s14 = sadd.s32 1, %s1109_s14   ;;  %s1285_s12 = smov %s1105_s13 }
 0x125   : > { %p10_p5 = scmp.ge.s32.totalorder %s13_s14, 4   ;;  %s1286_s13 = smov %s1288_s15 }
 0x127   :  { %12 = sbr.rel (!%p10_p5) target bundleno = 2 (0x2), region = 62 }

</bundles_post_ra>
